<compile_context>
chip_gen: v5e
topology: v5e:2x2
jax: 0.10.0
libtpu: 0.0.40
codegen_flags: <defaults>
</compile_context>

<pallas_src>
import functools

import jax
import jax.numpy as jnp
from jax.experimental import pallas as pl
from jax.experimental.pallas import tpu as pltpu


def _elu(x):
    # ELU(alpha=1): x if x > 0 else exp(x) - 1   (clamp exp arg for safety)
    return jnp.where(x > 0, x, jnp.exp(jnp.minimum(x, 0.0)) - 1.0)


def _softplus(x):
    # PyTorch Softplus(beta=1, threshold=20): log(1+exp(x)); linear for x > 20
    safe = jnp.minimum(x, 20.0)
    return jnp.where(x > 20.0, x, jnp.log1p(jnp.exp(safe)))


def mlp_decoder_kernel(x_ref,
                       w0_ref, b0_ref,
                       w1_ref, b1_ref,
                       w2_ref, b2_ref,
                       wh_ref, bh_ref,
                       out_ref, *, out_dim):
    in_dt = w0_ref.dtype  # matmul input dtype (f32 or bf16); accumulation is f32

    # trunk: Linear -> ELU -> Linear -> ELU -> Linear (f32 accumulation & math)
    h = jnp.dot(x_ref[...], w0_ref[...], preferred_element_type=jnp.float32)
    h = _elu(h + b0_ref[...].astype(jnp.float32)).astype(in_dt)
    h = jnp.dot(h, w1_ref[...], preferred_element_type=jnp.float32)
    h = _elu(h + b1_ref[...].astype(jnp.float32)).astype(in_dt)
    h = jnp.dot(h, w2_ref[...], preferred_element_type=jnp.float32)
    h = (h + b2_ref[...].astype(jnp.float32)).astype(in_dt)

    # fused heads: [ mean | cov_pre ] in a single MXU pass
    heads = jnp.dot(h, wh_ref[...], preferred_element_type=jnp.float32)
    heads = heads + bh_ref[...].astype(jnp.float32)

    # Softplus only on the cov lanes (lane >= out_dim).  The mask is a
    # [1, 2*out] row broadcast inside jnp.where — elementwise select, no
    # slicing/concat in the kernel.
    lane = jax.lax.broadcasted_iota(jnp.int32, (1, heads.shape[-1]), 1)
    out = jnp.where(lane < out_dim, heads, _softplus(heads))
    out_ref[...] = out.astype(out_ref.dtype)


def _pick_tile_b(B, max_tile=1024):
    """Largest multiple of 8 that divides B and is <= max_tile (full B otherwise)."""
    if B % 8 != 0:
        return B  # block dim == full array dim is always legal
    best, cand = 8, 8
    while cand <= min(B, max_tile):
        if B % cand == 0:
            best = cand
        cand += 8
    return best


def mlp_decoder(x, params, *, tile_b=None, input_dtype=None):
    """x: [B, in_dim]; params: dict of pre-transposed weights / biases.

    input_dtype: optional cast for x / weights at the pallas_call boundary
    (e.g. jnp.bfloat16 on v6e/v7x); accumulation stays f32 inside the kernel.
    """
    B, in_dim = x.shape
    out_dim = params["wm"].shape[1]

    if tile_b is None:
        tile_b = _pick_tile_b(B)
    assert B % tile_b == 0, "batch must be divisible by tile_b"

    if input_dtype is None:
        cast = lambda a: a
    else:
        cast = lambda a: a.astype(input_dtype)

    # Fuse the two head projections into one [hid, 2*out] weight / [1, 2*out] bias.
    wh = jnp.concatenate([params["wm"], params["wc"]], axis=1)
    bh = jnp.concatenate([params["bm"], params["bc"]], axis=1)

    args = (cast(x),
            cast(params["w0"]), cast(params["b0"]),
            cast(params["w1"]), cast(params["b1"]),
            cast(params["w2"]), cast(params["b2"]),
            cast(wh), cast(bh))

    x_spec = pl.BlockSpec((tile_b, in_dim), lambda i: (i, 0))
    out_spec = pl.BlockSpec((tile_b, 2 * out_dim), lambda i: (i, 0))

    def resident(shape):
        # Full-array block + constant index_map -> stays in VMEM across steps.
        # (Weights/biases are a few KiB; default double-buffering is fine.)
        return pl.BlockSpec(shape, lambda i: (0,) * len(shape))

    in_specs = [x_spec] + [resident(a.shape) for a in args[1:]]

    fused = pl.pallas_call(
        functools.partial(mlp_decoder_kernel, out_dim=out_dim),
        out_shape=jax.ShapeDtypeStruct((B, 2 * out_dim), jnp.float32),
        grid_spec=pltpu.PrefetchScalarGridSpec(
            num_scalar_prefetch=0,
            grid=(B // tile_b,),
            in_specs=in_specs,
            out_specs=out_spec,
        ),
        compiler_params=pltpu.CompilerParams(
            dimension_semantics=("parallel",)),
    )(*args)

    # Cheap wrapper-side split of the fused [mean | cov] output.
    return fused[:, :out_dim], fused[:, out_dim:]


def init_params(key, in_dim, out_dim, hidden_dim=32):
    """Deterministic synthetic init. Weights stored as [in, out] (pre-transposed),
    biases as [1, out] (PyTorch default uniform fan-in init)."""
    ks = jax.random.split(key, 10)

    def linear(kw, kb, fan_in, fan_out):
        bound = 1.0 / jnp.sqrt(fan_in)
        w = jax.random.uniform(kw, (fan_in, fan_out), jnp.float32, -bound, bound)
        b = jax.random.uniform(kb, (1, fan_out), jnp.float32, -bound, bound)
        return w, b

    w0, b0 = linear(ks[0], ks[1], in_dim, hidden_dim)
    w1, b1 = linear(ks[2], ks[3], hidden_dim, hidden_dim)
    w2, b2 = linear(ks[4], ks[5], hidden_dim, hidden_dim)
    wm, bm = linear(ks[6], ks[7], hidden_dim, out_dim)
    wc, bc = linear(ks[8], ks[9], hidden_dim, out_dim)
    return dict(w0=w0, b0=b0, w1=w1, b1=b1, w2=w2, b2=b2,
                wm=wm, bm=bm, wc=wc, bc=bc)


def reference(x, p):
    """Pure-JAX reference for correctness check."""
    h = _elu(x @ p["w0"] + p["b0"])
    h = _elu(h @ p["w1"] + p["b1"])
    h = h @ p["w2"] + p["b2"]
    mean = h @ p["wm"] + p["bm"]
    cov = jax.nn.softplus(h @ p["wc"] + p["bc"])
    return mean, cov


if __name__ == "__main__":
    key = jax.random.PRNGKey(0)
    k_x, k_p = jax.random.split(key)

    B, in_dim, hidden_dim, out_dim = 16, 16, 32, 8
    x = jax.random.normal(k_x, (B, in_dim), jnp.float32)
    params = init_params(k_p, in_dim, out_dim, hidden_dim)

    # f32 path (tight check).  tile_b auto-picks the full batch -> grid=(1,).
    mean, cov = mlp_decoder(x, params)
    jax.block_until_ready((mean, cov))

    mean_ref, cov_ref = reference(x, params)
    assert jnp.allclose(mean, mean_ref, atol=1e-5, rtol=1e-5)
    assert jnp.allclose(cov, cov_ref, atol=1e-5, rtol=1e-5)
    assert bool(jnp.all(cov > 0))

    # bf16-input path (v6e/v7x MXU-friendly); f32 accumulation keeps accuracy.
    mean_bf, cov_bf = mlp_decoder(x, params, input_dtype=jnp.bfloat16)
    jax.block_until_ready((mean_bf, cov_bf))
    assert jnp.allclose(mean_bf, mean_ref, atol=5e-2, rtol=5e-2)
    assert jnp.allclose(cov_bf, cov_ref, atol=5e-2, rtol=5e-2)
    assert bool(jnp.all(cov_bf > 0))

    print("KERNEL_OK")
</pallas_src>

<mosaic_0001>
module attributes {stable_mosaic.version = 11 : i64} {
  func.func @mlp_decoder_kernel(%arg0: i32, %arg1: memref<16x16xf32, #tpu.memory_space<vmem>>, %arg2: memref<16x32xf32, #tpu.memory_space<vmem>>, %arg3: memref<1x32xf32, #tpu.memory_space<vmem>>, %arg4: memref<32x32xf32, #tpu.memory_space<vmem>>, %arg5: memref<1x32xf32, #tpu.memory_space<vmem>>, %arg6: memref<32x32xf32, #tpu.memory_space<vmem>>, %arg7: memref<1x32xf32, #tpu.memory_space<vmem>>, %arg8: memref<32x16xf32, #tpu.memory_space<vmem>>, %arg9: memref<1x16xf32, #tpu.memory_space<vmem>>, %arg10: memref<16x16xf32, #tpu.memory_space<vmem>>) attributes {dimension_semantics = [#tpu.dimension_semantics<parallel>], iteration_bounds = array<i64: 1>, scalar_prefetch = 0 : i64, scratch_operands = 0 : i64, tpu.core_type = #tpu.core_type<tc>, window_params = [{transform_indices = @transform_0, window_bounds = array<i64: 16, 16>}, {pipeline_mode = #tpu.pipeline_mode<synchronous>, transform_indices = @transform_1, window_bounds = array<i64: 16, 32>}, {pipeline_mode = #tpu.pipeline_mode<synchronous>, transform_indices = @transform_2, window_bounds = array<i64: 1, 32>}, {pipeline_mode = #tpu.pipeline_mode<synchronous>, transform_indices = @transform_3, window_bounds = array<i64: 32, 32>}, {pipeline_mode = #tpu.pipeline_mode<synchronous>, transform_indices = @transform_4, window_bounds = array<i64: 1, 32>}, {pipeline_mode = #tpu.pipeline_mode<synchronous>, transform_indices = @transform_5, window_bounds = array<i64: 32, 32>}, {pipeline_mode = #tpu.pipeline_mode<synchronous>, transform_indices = @transform_6, window_bounds = array<i64: 1, 32>}, {pipeline_mode = #tpu.pipeline_mode<synchronous>, transform_indices = @transform_7, window_bounds = array<i64: 32, 16>}, {pipeline_mode = #tpu.pipeline_mode<synchronous>, transform_indices = @transform_8, window_bounds = array<i64: 1, 16>}, {transform_indices = @transform_9, window_bounds = array<i64: 16, 16>}]} {
    %c0 = arith.constant 0 : index
    %c0_0 = arith.constant 0 : index
    %0 = vector.load %arg1[%c0, %c0_0] : memref<16x16xf32, #tpu.memory_space<vmem>>, vector<16x16xf32>
    %c0_1 = arith.constant 0 : index
    %c0_2 = arith.constant 0 : index
    %1 = vector.load %arg2[%c0_1, %c0_2] : memref<16x32xf32, #tpu.memory_space<vmem>>, vector<16x32xf32>
    %cst = arith.constant dense<0.000000e+00> : vector<16x32xf32>
    %2 = tpu.matmul %0, %1, %cst {dimension_numbers = #tpu.dot_dimension_numbers<[1], [0], [0], [1], [0, 0, 1, 1], [], []>} : vector<16x16xf32>, vector<16x32xf32>, vector<16x32xf32> -> vector<16x32xf32>
    %c0_3 = arith.constant 0 : index
    %c0_4 = arith.constant 0 : index
    %3 = vector.load %arg3[%c0_3, %c0_4] : memref<1x32xf32, #tpu.memory_space<vmem>>, vector<1x32xf32>
    %4 = vector.broadcast %3 : vector<1x32xf32> to vector<16x32xf32>
    %5 = arith.addf %2, %4 : vector<16x32xf32>
    %cst_5 = arith.constant 0.000000e+00 : f32
    %6 = vector.broadcast %cst_5 : f32 to vector<16x32xf32>
    %7 = arith.cmpf ogt, %5, %6 : vector<16x32xf32>
    %cst_6 = arith.constant 0.000000e+00 : f32
    %8 = vector.broadcast %cst_6 : f32 to vector<16x32xf32>
    %9 = arith.minimumf %5, %8 : vector<16x32xf32>
    %10 = math.exp %9 : vector<16x32xf32>
    %cst_7 = arith.constant 1.000000e+00 : f32
    %11 = vector.broadcast %cst_7 : f32 to vector<16x32xf32>
    %12 = arith.subf %10, %11 : vector<16x32xf32>
    %13 = arith.select %7, %5, %12 : vector<16x32xi1>, vector<16x32xf32>
    %c0_8 = arith.constant 0 : index
    %c0_9 = arith.constant 0 : index
    %14 = vector.load %arg4[%c0_8, %c0_9] : memref<32x32xf32, #tpu.memory_space<vmem>>, vector<32x32xf32>
    %cst_10 = arith.constant dense<0.000000e+00> : vector<16x32xf32>
    %15 = tpu.matmul %13, %14, %cst_10 {dimension_numbers = #tpu.dot_dimension_numbers<[1], [0], [0], [1], [0, 0, 1, 1], [], []>} : vector<16x32xf32>, vector<32x32xf32>, vector<16x32xf32> -> vector<16x32xf32>
    %c0_11 = arith.constant 0 : index
    %c0_12 = arith.constant 0 : index
    %16 = vector.load %arg5[%c0_11, %c0_12] : memref<1x32xf32, #tpu.memory_space<vmem>>, vector<1x32xf32>
    %17 = vector.broadcast %16 : vector<1x32xf32> to vector<16x32xf32>
    %18 = arith.addf %15, %17 : vector<16x32xf32>
    %cst_13 = arith.constant 0.000000e+00 : f32
    %19 = vector.broadcast %cst_13 : f32 to vector<16x32xf32>
    %20 = arith.cmpf ogt, %18, %19 : vector<16x32xf32>
    %cst_14 = arith.constant 0.000000e+00 : f32
    %21 = vector.broadcast %cst_14 : f32 to vector<16x32xf32>
    %22 = arith.minimumf %18, %21 : vector<16x32xf32>
    %23 = math.exp %22 : vector<16x32xf32>
    %cst_15 = arith.constant 1.000000e+00 : f32
    %24 = vector.broadcast %cst_15 : f32 to vector<16x32xf32>
    %25 = arith.subf %23, %24 : vector<16x32xf32>
    %26 = arith.select %20, %18, %25 : vector<16x32xi1>, vector<16x32xf32>
    %c0_16 = arith.constant 0 : index
    %c0_17 = arith.constant 0 : index
    %27 = vector.load %arg6[%c0_16, %c0_17] : memref<32x32xf32, #tpu.memory_space<vmem>>, vector<32x32xf32>
    %cst_18 = arith.constant dense<0.000000e+00> : vector<16x32xf32>
    %28 = tpu.matmul %26, %27, %cst_18 {dimension_numbers = #tpu.dot_dimension_numbers<[1], [0], [0], [1], [0, 0, 1, 1], [], []>} : vector<16x32xf32>, vector<32x32xf32>, vector<16x32xf32> -> vector<16x32xf32>
    %c0_19 = arith.constant 0 : index
    %c0_20 = arith.constant 0 : index
    %29 = vector.load %arg7[%c0_19, %c0_20] : memref<1x32xf32, #tpu.memory_space<vmem>>, vector<1x32xf32>
    %30 = vector.broadcast %29 : vector<1x32xf32> to vector<16x32xf32>
    %31 = arith.addf %28, %30 : vector<16x32xf32>
    %c0_21 = arith.constant 0 : index
    %c0_22 = arith.constant 0 : index
    %32 = vector.load %arg8[%c0_21, %c0_22] : memref<32x16xf32, #tpu.memory_space<vmem>>, vector<32x16xf32>
    %cst_23 = arith.constant dense<0.000000e+00> : vector<16x16xf32>
    %33 = tpu.matmul %31, %32, %cst_23 {dimension_numbers = #tpu.dot_dimension_numbers<[1], [0], [0], [1], [0, 0, 1, 1], [], []>} : vector<16x32xf32>, vector<32x16xf32>, vector<16x16xf32> -> vector<16x16xf32>
    %c0_24 = arith.constant 0 : index
    %c0_25 = arith.constant 0 : index
    %34 = vector.load %arg9[%c0_24, %c0_25] : memref<1x16xf32, #tpu.memory_space<vmem>>, vector<1x16xf32>
    %35 = vector.broadcast %34 : vector<1x16xf32> to vector<16x16xf32>
    %36 = arith.addf %33, %35 : vector<16x16xf32>
    %37 = tpu.iota {dimensions = array<i32: 1>} : vector<1x16xi32>
    %c8_i32 = arith.constant 8 : i32
    %38 = vector.broadcast %c8_i32 : i32 to vector<1x16xi32>
    %39 = arith.cmpi slt, %37, %38 : vector<1x16xi32>
    %cst_26 = arith.constant 2.000000e+01 : f32
    %40 = vector.broadcast %cst_26 : f32 to vector<16x16xf32>
    %41 = arith.minimumf %36, %40 : vector<16x16xf32>
    %cst_27 = arith.constant 2.000000e+01 : f32
    %42 = vector.broadcast %cst_27 : f32 to vector<16x16xf32>
    %43 = arith.cmpf ogt, %36, %42 : vector<16x16xf32>
    %44 = math.exp %41 : vector<16x16xf32>
    %45 = math.log1p %44 : vector<16x16xf32>
    %46 = arith.select %43, %36, %45 : vector<16x16xi1>, vector<16x16xf32>
    %47 = vector.shape_cast %39 : vector<1x16xi1> to vector<1x16xi1>
    %48 = vector.broadcast %47 : vector<1x16xi1> to vector<16x16xi1>
    %49 = arith.select %48, %36, %46 : vector<16x16xi1>, vector<16x16xf32>
    %c0_28 = arith.constant 0 : index
    %c0_29 = arith.constant 0 : index
    %50 = vector.load %arg10[%c0_28, %c0_29] : memref<16x16xf32, #tpu.memory_space<vmem>>, vector<16x16xf32>
    tpu.vector_store %arg10[%c0_28, %c0_29], %49 {strides = array<i32>} : memref<16x16xf32, #tpu.memory_space<vmem>>, vector<16x16xf32>,
    return
  }
  func.func @transform_0(%arg0: i32) -> (i32, i32) {
    %c0_i32 = arith.constant 0 : i32
    %c0_i32_0 = arith.constant 0 : i32
    return %arg0, %c0_i32 : i32, i32
  }
  func.func @transform_1(%arg0: i32) -> (i32, i32) {
    %c0_i32 = arith.constant 0 : i32
    %c0_i32_0 = arith.constant 0 : i32
    %c0_i32_1 = arith.constant 0 : i32
    return %c0_i32, %c0_i32_0 : i32, i32
  }
  func.func @transform_2(%arg0: i32) -> (i32, i32) {
    %c0_i32 = arith.constant 0 : i32
    %c0_i32_0 = arith.constant 0 : i32
    %c0_i32_1 = arith.constant 0 : i32
    return %c0_i32, %c0_i32_0 : i32, i32
  }
  func.func @transform_3(%arg0: i32) -> (i32, i32) {
    %c0_i32 = arith.constant 0 : i32
    %c0_i32_0 = arith.constant 0 : i32
    %c0_i32_1 = arith.constant 0 : i32
    return %c0_i32, %c0_i32_0 : i32, i32
  }
  func.func @transform_4(%arg0: i32) -> (i32, i32) {
    %c0_i32 = arith.constant 0 : i32
    %c0_i32_0 = arith.constant 0 : i32
    %c0_i32_1 = arith.constant 0 : i32
    return %c0_i32, %c0_i32_0 : i32, i32
  }
  func.func @transform_5(%arg0: i32) -> (i32, i32) {
    %c0_i32 = arith.constant 0 : i32
    %c0_i32_0 = arith.constant 0 : i32
    %c0_i32_1 = arith.constant 0 : i32
    return %c0_i32, %c0_i32_0 : i32, i32
  }
  func.func @transform_6(%arg0: i32) -> (i32, i32) {
    %c0_i32 = arith.constant 0 : i32
    %c0_i32_0 = arith.constant 0 : i32
    %c0_i32_1 = arith.constant 0 : i32
    return %c0_i32, %c0_i32_0 : i32, i32
  }
  func.func @transform_7(%arg0: i32) -> (i32, i32) {
    %c0_i32 = arith.constant 0 : i32
    %c0_i32_0 = arith.constant 0 : i32
    %c0_i32_1 = arith.constant 0 : i32
    return %c0_i32, %c0_i32_0 : i32, i32
  }
  func.func @transform_8(%arg0: i32) -> (i32, i32) {
    %c0_i32 = arith.constant 0 : i32
    %c0_i32_0 = arith.constant 0 : i32
    %c0_i32_1 = arith.constant 0 : i32
    return %c0_i32, %c0_i32_0 : i32, i32
  }
  func.func @transform_9(%arg0: i32) -> (i32, i32) {
    %c0_i32 = arith.constant 0 : i32
    %c0_i32_0 = arith.constant 0 : i32
    return %arg0, %c0_i32 : i32, i32
  }
}

</mosaic_0001>

<bundles_post_ra>
// kernel: tpu_custom_call.1
= control target key start
LH: loop header
LB: loop body
LE: loop exit
PB: predicated region body
PF: predicated region fallthrough
CT: control target
= control target key end

     0   :  { %14 = vsyncpa [#allocation3], 0  ;;  %s538_s0 = inlined_call_operand.vmem [shape: f32[16,16], index: 0, kind: input, shape index: {}]   ;;  %s539_s1 = inlined_call_operand.hbm [shape: f32[16,32], index: 1, kind: input, shape index: {}]   ;;  %s540_s2 = inlined_call_operand.vmem [shape: f32[1,32], index: 2, kind: input, shape index: {}]   ;;  %s541_s3 = inlined_call_operand.vmem [shape: f32[32,32], index: 3, kind: input, shape index: {}]   ;;  %s542_s4 = inlined_call_operand.vmem [shape: f32[1,32], index: 4, kind: input, shape index: {}]   ;;  %s543_s5 = inlined_call_operand.hbm [shape: f32[32,32], index: 5, kind: input, shape index: {}]   ;;  %s544_s6 = inlined_call_operand.vmem [shape: f32[1,32], index: 6, kind: input, shape index: {}]   ;;  %s545_s7 = inlined_call_operand.vmem [shape: f32[32,16], index: 7, kind: input, shape index: {}]   ;;  %s546_s8 = inlined_call_operand.vmem [shape: f32[1,16], index: 8, kind: input, shape index: {}]   ;;  %s547_s9 = inlined_call_operand.hbm [shape: f32[16,16], index: 9, kind: output, shape index: {}]  }
   0x1   :  { %15 = vsyncpa [#allocation6], 0 }
   0x2   :  { %16 = vsyncpa [#allocation4], 0  ;;  %s23_s11 = sshll.u32 %s539_s1, 4  ;;  %s411_s12 = smov [#allocation2]   ;;  %s24_s11 = int_to_ptr.hbm [resolvable:$true] %s23_s11 }
   0x3   :  { %s25_s13 = sshll.u32 %s411_s12, 4  ;;  %s42_s16 = sshll.u32 %s543_s5, 4  ;;  %s26_s13 = int_to_ptr.vmem [resolvable:$true] %s25_s13  ;;  %s43_s16 = int_to_ptr.hbm [resolvable:$true] %s42_s16 }
   0x4   :  { %s412_s17 = smov 128   ;;  %s413_s18 = smov 8  }
   0x5   :  { %31 = dma.hbm_to_vmem [thread:$0]  %s24_s11, 256, %s26_s13, [#allocation3], %s412_s17, %s412_s17, %s413_s18  }
   0x6   :  { %s414_s19 = smov [#allocation5]  }
   0x7   :  { %s44_s20 = sshll.u32 %s414_s19, 4  ;;  %s45_s20 = int_to_ptr.vmem [resolvable:$true] %s44_s20 }
   0x8   :  { %50 = dma.hbm_to_vmem [thread:$0]  %s43_s16, 512, %s45_s20, [#allocation6], %s412_s17, %s412_s17, %s413_s18  }
   0x9   :  { %405 = dma.done.wait [#allocation3], 256  }
   0xa   :  { %406 = vsyncadd [#allocation3], 4294967040 }
   0xb   :  { %407 = dma.done.wait [#allocation6], 512  }
   0xc   :  { %408 = vsyncadd [#allocation6], 4294966784  ;;  %v68_v0 = vld [vmem:[#allocation2 + $0x8] sm:$0xff]  ;;  %v67_v1 = vld [vmem:[#allocation2] sm:$0xff]  ;;  %vm73_vm0 = vcmask 130048   ;;  %vm123_vm1 = vcmask 261120   ;;  %v239_v63 = vlaneseq }
   0xd   :  { %94 = vmatpush.msra.mxu0 %v68_v0  ;;  %v65_v2 = vld [vmem:[%s538_s0] sm:$0xff]  ;;  %v66_v3 = vld [vmem:[%s538_s0 + $0x8] sm:$0xff]  ;;  %v118_v4 = vld [vmem:[%s541_s3 + $0x18] sm:$0xff]  ;;  %s282_s23 = sshll.u32 %s547_s9, 4  ;;  %s283_s23 = int_to_ptr.hbm [resolvable:$true] %s282_s23 }
   0xe   :  { %142 = vmatpush.msra.mxu1 %v118_v4  ;;  %v117_v5 = vld [vmem:[%s541_s3 + $0x10] sm:$0xff]  ;;  %v116_v6 = vld [vmem:[%s541_s3 + $0x8] sm:$0xff]  ;;  %v115_v7 = vld [vmem:[%s541_s3] sm:$0xff] }
   0xf   :  { %95 = vmatpush.msra.mxu0 %v67_v1  ;;  %v313_v8 = vld [vmem:[%s540_s2] ss:$0 sm:$0xff]  ;;  %v168_v23 = vld [vmem:[#allocation5 + $0x18] sm:$0xff]  ;;  %v166_v25 = vld [vmem:[#allocation5 + $0x8] sm:$0xff] }
  0x10   :  { %296 = vmatmul.msk.f32.vlgmr.msra.gmra.mxu0 %vm73_vm0, %v65_v2  ;;  %143 = vmatpush.msra.mxu1 %v117_v5  ;;  %v167_v24 = vld [vmem:[#allocation5 + $0x10] sm:$0xff]  ;;  %v165_v26 = vld [vmem:[#allocation5] sm:$0xff]  ;;  %v205_v27 = vld [vmem:[%s545_s7 + $0x18] sm:$0xff]  ;;  %v240_v2 = vand.u32 127, %v239_v63 }
  0x11   :  { %191 = vmatpush.msra.mxu2 %v168_v23  ;;  %v204_v28 = vld [vmem:[%s545_s7 + $0x10] sm:$0xff]  ;;  %228 = vmatpush.msra.mxu3 %v205_v27  ;;  %v314_v29 = vld [vmem:[%s542_s4] ss:$0 sm:$0xff]  ;;  %v203_v44 = vld [vmem:[%s545_s7 + $0x8] sm:$0xff] }
  0x12   :  { %144 = vmatpush.msra.mxu1 %v116_v6  ;;  %v202_v45 = vld [vmem:[%s545_s7] sm:$0xff]  ;;  %vm241_vm7 = vcmp.lt.s32.totalorder %v240_v2, 8 }
  0x13   :  { %192 = vmatpush.msra.mxu2 %v167_v24  ;;  %229 = vmatpush.msra.mxu3 %v204_v28  ;;  %v315_v46 = vld [vmem:[%s544_s6] ss:$0 sm:$0xff]  ;;  %s415_s6 = smov [#allocation7]  }
  0x14   :  { %145 = vmatpush.msra.mxu1 %v115_v7  ;;  %v316_v51 = vld [vmem:[%s546_s8] ss:$0 sm:$0xff]  ;;  %s280_s7 = sshll.u32 %s415_s6, 4  ;;  %s281_s7 = int_to_ptr.vmem [resolvable:$true] %s280_s7 }
  0x15   :  { %193 = vmatpush.msra.mxu2 %v166_v25  ;;  %230 = vmatpush.msra.mxu3 %v203_v44 }
  0x17   :  { %194 = vmatpush.msra.mxu2 %v165_v26  ;;  %231 = vmatpush.msra.mxu3 %v202_v45 }
  0x18   :  { %297 = vmatmul.msk.f32.gmra.mxu0 %vm73_vm0, %v66_v3 }
  0x8d   :  { %v97_v9 = vpop.f32.mrf.mxu0 }
  0x8e   :  { %v98_v10 = vadd.f32 %v313_v8, %v97_v9 }
  0x90   :  { %v105_v11 = vmin.f32 %v98_v10, 0.0  ;;  %vm103_vm2 = vcmp.gt.f32.partialorder %v98_v10, 0.0 }
  0x92   :  { %v107_v12 = vmul.f32 1.442695, %v105_v11 }
  0x94   :  { %317 = vpow2.f32 %v107_v12 }
  0x95   :  { %v100_v13 = vpop.f32.mrf.mxu0 }
  0x96   :  { %v101_v14 = vadd.f32 %v313_v8, %v100_v13 }
  0x98   :  { %v106_v15 = vmin.f32 %v101_v14, 0.0  ;;  %vm104_vm3 = vcmp.gt.f32.partialorder %v101_v14, 0.0 }
  0x9a   :  { %v318_v16 = vpop.eup %317  ;;  %v109_v17 = vmul.f32 1.442695, %v106_v15 }
  0x9b   :  { %v298_v18 = vadd.f32 -1.0, %v318_v16 }
  0x9c   :  { %319 = vpow2.f32 %v109_v17 }
  0x9d   :  { %v113_v19 = vsel %vm103_vm2, %v98_v10, %v298_v18 }
  0x9e   :  { %300 = vmatmul.msk.f32.vlgmr.msra.gmra.mxu1 %vm123_vm1, %v113_v19 }
  0xa2   :  { %v320_v20 = vpop.eup %319 }
  0xa3   :  { %v299_v21 = vadd.f32 -1.0, %v320_v20 }
  0xa5   :  { %v114_v22 = vsel %vm104_vm3, %v101_v14, %v299_v21 }
  0xa6   :  { %301 = vmatmul.msk.f32.gmra.mxu1 %vm123_vm1, %v114_v22 }
 0x11b   :  { %v147_v30 = vpop.f32.mrf.mxu1 }
 0x11c   :  { %v148_v31 = vadd.f32 %v314_v29, %v147_v30 }
 0x11e   :  { %v155_v32 = vmin.f32 %v148_v31, 0.0  ;;  %vm153_vm4 = vcmp.gt.f32.partialorder %v148_v31, 0.0 }
 0x120   :  { %v157_v33 = vmul.f32 1.442695, %v155_v32 }
 0x122   :  { %321 = vpow2.f32 %v157_v33 }
 0x123   :  { %v150_v34 = vpop.f32.mrf.mxu1 }
 0x124   :  { %v151_v35 = vadd.f32 %v314_v29, %v150_v34 }
 0x126   :  { %v156_v36 = vmin.f32 %v151_v35, 0.0  ;;  %vm154_vm5 = vcmp.gt.f32.partialorder %v151_v35, 0.0 }
 0x128   :  { %v322_v37 = vpop.eup %321  ;;  %v159_v38 = vmul.f32 1.442695, %v156_v36 }
 0x129   :  { %v302_v39 = vadd.f32 -1.0, %v322_v37 }
 0x12a   :  { %323 = vpow2.f32 %v159_v38 }
 0x12b   :  { %v163_v40 = vsel %vm153_vm4, %v148_v31, %v302_v39 }
 0x12c   :  { %304 = vmatmul.msk.f32.vlgmr.msra.gmra.mxu2 %vm123_vm1, %v163_v40 }
 0x130   :  { %v324_v41 = vpop.eup %323 }
 0x131   :  { %v303_v42 = vadd.f32 -1.0, %v324_v41 }
 0x133   :  { %v164_v43 = vsel %vm154_vm5, %v151_v35, %v303_v42 }
 0x134   :  { %305 = vmatmul.msk.f32.gmra.mxu2 %vm123_vm1, %v164_v43 }
 0x1af   :  { %v196_v47 = vpop.f32.mrf.mxu2 }
 0x1b0   :  { %v197_v48 = vadd.f32 %v315_v46, %v196_v47 }
 0x1b2   :  { %306 = vmatmul.msk.f32.vlgmr.msra.gmra.mxu3 %vm123_vm1, %v197_v48 }
 0x1b7   :  { %v199_v49 = vpop.f32.mrf.mxu2 }
 0x1b8   :  { %v200_v50 = vadd.f32 %v315_v46, %v199_v49 }
 0x1ba   :  { %307 = vmatmul.msk.f32.gmra.mxu3 %vm123_vm1, %v200_v50 }
 0x235   :  { %v233_v52 = vpop.f32.mrf.mxu3 }
 0x236   :  { %v234_v53 = vadd.f32 %v316_v51, %v233_v52 }
 0x238   :  { %v242_v54 = vmin.f32 %v234_v53, 20.0  ;;  %vm244_vm8 = vcmp.gt.f32.partialorder %v234_v53, 20.0 }
 0x23a   :  { %v246_v55 = vmul.f32 1.442695, %v242_v54 }
 0x23c   :  { %325 = vpow2.f32 %v246_v55 }
 0x23d   :  { %v236_v56 = vpop.f32.mrf.mxu3 }
 0x23e   :  { %v237_v57 = vadd.f32 %v316_v51, %v236_v56 }
 0x240   :  { %v243_v58 = vmin.f32 %v237_v57, 20.0  ;;  %vm245_vm10 = vcmp.gt.f32.partialorder %v237_v57, 20.0 }
 0x242   :  { %v326_v59 = vpop.eup %325  ;;  %v248_v60 = vmul.f32 1.442695, %v243_v58 }
 0x243   :  { %v250_v61 = vadd.f32 1.0, %v326_v59  ;;  %v253_v62 = vmul.f32 -0.5, %v326_v59  ;;  %v256_v1 = vand.u32 2147483647, %v326_v59 }
 0x244   :  { %327 = vpow2.f32 %v248_v60 }
 0x245   :  { %329 = vlog2.f32 %v250_v61  ;;  %v254_v0 = vadd.f32 1.0, %v253_v62  ;;  %vm257_vm6 = vcmp.lt.f32.partialorder %v256_v1, 0.0004427343 }
 0x247   :  { %v255_v7 = vmul.f32 %v326_v59, %v254_v0 }
 0x24a   :  { %v328_v3 = vpop.eup %327 }
 0x24b   :  { %v330_v4 = vpop.eup %329  ;;  %v259_v5 = vadd.f32 1.0, %v328_v3  ;;  %v262_v8 = vmul.f32 -0.5, %v328_v3  ;;  %v265_v13 = vand.u32 2147483647, %v328_v3 }
 0x24c   :  { %v252_v6 = vmul.f32 0.6931472, %v330_v4 }
 0x24d   :  { %331 = vlog2.f32 %v259_v5  ;;  %v263_v11 = vadd.f32 1.0, %v262_v8  ;;  %vm266_vm9 = vcmp.lt.f32.partialorder %v265_v13, 0.0004427343 }
 0x24e   :  { %v258_v9 = vsel %vm257_vm6, %v255_v7, %v252_v6 }
 0x24f   :  { %v268_v10 = vsel %vm244_vm8, %v234_v53, %v258_v9  ;;  %v264_v16 = vmul.f32 %v328_v3, %v263_v11 }
 0x250   :  { %v272_v12 = vsel %vm241_vm7, %v234_v53, %v268_v10 }
 0x251   :  { %274 = vst.msk [vmem:[#allocation7] sm:$0xff] %vm73_vm0, %v272_v12 }
 0x253   :  { %v332_v14 = vpop.eup %331 }
 0x254   :  { %v261_v15 = vmul.f32 0.6931472, %v332_v14 }
 0x256   :  { %v267_v17 = vsel %vm266_vm9, %v264_v16, %v261_v15 }
 0x257   :  { %v269_v18 = vsel %vm245_vm10, %v237_v57, %v267_v17 }
 0x258   :  { %v273_v19 = vsel %vm241_vm7, %v237_v57, %v269_v18 }
 0x259   :  { %275 = vst.msk [vmem:[#allocation7 + $0x8] sm:$0xff] %vm73_vm0, %v273_v19 }
 0x25a   :  { %288 = dma.vmem_to_hbm [thread:$0]  %s281_s7, 256, %s283_s23, [#allocation4], %s412_s17, %s412_s17, %s413_s18  }
 0x25b   :  { %409 = dma.done.wait [#allocation4], 256  }
 0x25c   :  { %410 = vsyncadd [#allocation4], 4294967040 }
 0x25d   :  { %293 = vsyncpa [#allocation3], 1 }
 0x25e   :  { %294 = vsyncpa [#allocation6], 1 }
 0x25f   :  { %295 = vsyncpa [#allocation4], 1 }

</bundles_post_ra>
